<compile_context>
chip_gen: v5e
topology: v5e:2x2
jax: 0.10.0
libtpu: 0.0.40
codegen_flags: <defaults>
</compile_context>

<pallas_src>
import jax
import jax.numpy as jnp
from jax.experimental import pallas as pl

M, K, N = 120, 256, 256  # fixed by the module's parameter shapes


def linear_kernel(x_ref, y_ref, w_ref, b_ref, o_ref):
    # MXU matmul with f32 accumulation, then fused bias add + residual add (VPU).
    acc = jnp.dot(y_ref[...], w_ref[...], preferred_element_type=jnp.float32)
    # b_ref is (1, N) (row-broadcast) or (M, N); jnp broadcasting handles both.
    o_ref[...] = (x_ref[...] + acc + b_ref[...]).astype(o_ref.dtype)


def linear_forward(x, y, weight, bias):
    assert x.shape == (M, N)
    assert y.shape == (M, K)
    assert weight.shape == (K, N)
    assert bias.shape[1] == N and bias.shape[0] in (1, M)
    mb = bias.shape[0]  # 1 -> row-broadcast bias, M -> full per-row bias

    itemsize = 4  # f32
    bytes_accessed = itemsize * (M * N          # x read
                                 + M * K        # y read
                                 + K * N        # weight read
                                 + mb * N       # bias read
                                 + M * N)       # output write

    return pl.pallas_call(
        linear_kernel,
        out_shape=jax.ShapeDtypeStruct((M, N), x.dtype),
        # No grid: single invocation, every operand is one full-array VMEM block.
        in_specs=[
            pl.BlockSpec((M, N), lambda: (0, 0)),   # x (residual)
            pl.BlockSpec((M, K), lambda: (0, 0)),   # y (matmul lhs)
            pl.BlockSpec((K, N), lambda: (0, 0)),   # weight
            pl.BlockSpec((mb, N), lambda: (0, 0)),  # bias (row or full)
        ],
        out_specs=pl.BlockSpec((M, N), lambda: (0, 0)),
        # Output reuses x's buffer (same shape/dtype); donate x at jit boundary.
        input_output_aliases={0: 0},
        cost_estimate=pl.CostEstimate(
            flops=2 * M * K * N,
            transcendentals=0,
            bytes_accessed=bytes_accessed,
        ),
    )(x, y, weight, bias)


if __name__ == "__main__":
    # Deterministic parameters, matching torch.ones(...) in the module __init__.
    weight = jnp.ones((K, N), dtype=jnp.float32)
    # Module bias is torch.ones(120, 256): row-constant, so stream one row only.
    bias = jnp.ones((1, N), dtype=jnp.float32)

    # Deterministic example inputs.
    key = jax.random.PRNGKey(0)
    kx, ky = jax.random.split(key)
    x = jax.random.normal(kx, (M, N), dtype=jnp.float32)
    y = jax.random.normal(ky, (M, K), dtype=jnp.float32)

    # Reference in plain JAX (computed before x is donated to the kernel call).
    ref = x + (y @ weight) + jnp.ones((M, N), dtype=jnp.float32)
    ref = jax.block_until_ready(ref)

    fwd = jax.jit(linear_forward, donate_argnums=(0,))
    out = jax.block_until_ready(fwd(x, y, weight, bias))

    assert jnp.allclose(out, ref, atol=1e-4, rtol=1e-4), "mismatch vs reference"

    print("KERNEL_OK")
</pallas_src>

<mosaic_0001>
module attributes {stable_mosaic.version = 11 : i64} {
  func.func @linear_kernel(%arg0: memref<120x256xf32, #tpu.memory_space<vmem>>, %arg1: memref<120x256xf32, #tpu.memory_space<vmem>>, %arg2: memref<256x256xf32, #tpu.memory_space<vmem>>, %arg3: memref<1x256xf32, #tpu.memory_space<vmem>>, %arg4: memref<120x256xf32, #tpu.memory_space<vmem>>) attributes {dimension_semantics = [], scalar_prefetch = 0 : i64, scratch_operands = 0 : i64, tpu.core_type = #tpu.core_type<tc>} {
    %c0 = arith.constant 0 : index
    %c0_0 = arith.constant 0 : index
    %0 = vector.load %arg1[%c0, %c0_0] : memref<120x256xf32, #tpu.memory_space<vmem>>, vector<120x256xf32>
    %c0_1 = arith.constant 0 : index
    %c0_2 = arith.constant 0 : index
    %1 = vector.load %arg2[%c0_1, %c0_2] : memref<256x256xf32, #tpu.memory_space<vmem>>, vector<256x256xf32>
    %cst = arith.constant dense<0.000000e+00> : vector<120x256xf32>
    %2 = tpu.matmul %0, %1, %cst {dimension_numbers = #tpu.dot_dimension_numbers<[1], [0], [0], [1], [0, 0, 1, 1], [], []>} : vector<120x256xf32>, vector<256x256xf32>, vector<120x256xf32> -> vector<120x256xf32>
    %c0_3 = arith.constant 0 : index
    %c0_4 = arith.constant 0 : index
    %3 = vector.load %arg0[%c0_3, %c0_4] : memref<120x256xf32, #tpu.memory_space<vmem>>, vector<120x256xf32>
    %4 = arith.addf %3, %2 : vector<120x256xf32>
    %c0_5 = arith.constant 0 : index
    %c0_6 = arith.constant 0 : index
    %5 = vector.load %arg3[%c0_5, %c0_6] : memref<1x256xf32, #tpu.memory_space<vmem>>, vector<1x256xf32>
    %6 = vector.broadcast %5 : vector<1x256xf32> to vector<120x256xf32>
    %7 = arith.addf %4, %6 : vector<120x256xf32>
    %c0_7 = arith.constant 0 : index
    %c0_8 = arith.constant 0 : index
    %8 = vector.load %arg4[%c0_7, %c0_8] : memref<120x256xf32, #tpu.memory_space<vmem>>, vector<120x256xf32>
    tpu.vector_store %arg4[%c0_7, %c0_8], %7 {strides = array<i32>} : memref<120x256xf32, #tpu.memory_space<vmem>>, vector<120x256xf32>,
    return
  }
}

</mosaic_0001>

<bundles_post_ra>
// kernel: linear_forward.1
= control target key start
LH: loop header
LB: loop body
LE: loop exit
PB: predicated region body
PF: predicated region fallthrough
CT: control target
= control target key end

     0   :  { %9 = vsyncpa [#allocation3], 0  ;;  %s753_s0 = inlined_call_operand.hbm [shape: f32[120,256], index: 0, kind: input, shape index: {}, may-alias: {0,4}]   ;;  %s754_s1 = inlined_call_operand.hbm [shape: f32[120,256], index: 1, kind: input, shape index: {}]   ;;  %s755_s2 = inlined_call_operand.hbm [shape: f32[256,256], index: 2, kind: input, shape index: {}]   ;;  %s756_s3 = inlined_call_operand.vmem [shape: f32[1,256], index: 3, kind: input, shape index: {}]   ;;  %s757_s4 = inlined_call_operand.hbm [shape: f32[120,256], index: 4, kind: output, shape index: {}, may-alias: {0,4}]  }
   0x1   :  { %10 = vsyncpa [#allocation6], 0 }
   0x2   :  { %11 = vsyncpa [#allocation4], 0  ;;  %s29_s17 = sshll.u32 %s754_s1, 4  ;;  %s661_s18 = smov [#allocation5]   ;;  %s30_s17 = int_to_ptr.hbm [resolvable:$true] %s29_s17 }
   0x3   :  { %s31_s19 = sshll.u32 %s661_s18, 4  ;;  %s16_s22 = sshll.u32 %s753_s0, 4  ;;  %s32_s19 = int_to_ptr.vmem [resolvable:$true] %s31_s19  ;;  %s17_s22 = int_to_ptr.hbm [resolvable:$true] %s16_s22 }
   0x4   :  { %s662_s23 = smov 256   ;;  %s663_s24 = smov 16  }
   0x5   :  { %37 = dma.hbm_to_vmem [thread:$0]  %s30_s17, 3840, %s32_s19, [#allocation6], %s662_s23, %s662_s23, %s663_s24  }
   0x6   :  { %s664_s25 = smov [#allocation2]   ;;  %s42_s1 = sshll.u32 %s755_s2, 4  ;;  %s43_s1 = int_to_ptr.hbm [resolvable:$true] %s42_s1 }
   0x7   :  { %s18_s26 = sshll.u32 %s664_s25, 4  ;;  %s665_s0 = smov [#allocation7]   ;;  %s19_s26 = int_to_ptr.vmem [resolvable:$true] %s18_s26 }
   0x8   :  { %24 = dma.hbm_to_vmem [thread:$0]  %s17_s22, 3840, %s19_s26, [#allocation3], %s662_s23, %s662_s23, %s663_s24  }
   0x9   :  { %s44_s29 = sshll.u32 %s665_s0, 4  ;;  %s45_s29 = int_to_ptr.vmem [resolvable:$true] %s44_s29 }
   0xa   :  { %50 = dma.hbm_to_vmem [thread:$0]  %s43_s1, 8192, %s45_s29, [#allocation6], %s662_s23, %s662_s23, %s663_s24  }
   0xb   :  { %655 = dma.done.wait [#allocation3], 3840  }
   0xc   :  { %656 = vsyncadd [#allocation3], 4294963456 }
   0xd   :  { %657 = dma.done.wait [#allocation6], 12032  }
   0xe   :  { %658 = vsyncadd [#allocation6], 4294955264  ;;  %v126_v0 = vld [vmem:[#allocation7 + $0xf8] sm:$0xff]  ;;  %v124_v2 = vld [vmem:[#allocation7 + $0xe8] sm:$0xff]  ;;  %s539_s8 = sshll.u32 %s757_s4, 4  ;;  %s540_s8 = int_to_ptr.hbm [resolvable:$true] %s539_s8 }
   0xf   :  { %v158_v1 = vld [vmem:[#allocation7 + $0x1f8] sm:$0xff]  ;;  %283 = vmatpush.msra.mxu2 %v126_v0  ;;  %v156_v3 = vld [vmem:[#allocation7 + $0x1e8] sm:$0xff]  ;;  %v125_v6 = vld [vmem:[#allocation7 + $0xf0] sm:$0xff] }
  0x10   :  { %345 = vmatpush.msra.mxu3 %v158_v1  ;;  %v122_v4 = vld [vmem:[#allocation7 + $0xd8] sm:$0xff]  ;;  %v157_v7 = vld [vmem:[#allocation7 + $0x1f0] sm:$0xff]  ;;  %v123_v8 = vld [vmem:[#allocation7 + $0xe0] sm:$0xff]  ;;  %159 = vmatpush.msra.mxu0 %v125_v6 }
  0x11   :  { %v154_v5 = vld [vmem:[#allocation7 + $0x1d8] sm:$0xff]  ;;  %284 = vmatpush.msra.mxu2 %v124_v2  ;;  %v155_v9 = vld [vmem:[#allocation7 + $0x1e0] sm:$0xff]  ;;  %221 = vmatpush.msra.mxu1 %v157_v7  ;;  %v120_v10 = vld [vmem:[#allocation7 + $0xc8] sm:$0xff] }
  0x12   :  { %346 = vmatpush.msra.mxu3 %v156_v3  ;;  %v152_v11 = vld [vmem:[#allocation7 + $0x1c8] sm:$0xff]  ;;  %v121_v12 = vld [vmem:[#allocation7 + $0xd0] sm:$0xff]  ;;  %160 = vmatpush.msra.mxu0 %v123_v8  ;;  %v118_v14 = vld [vmem:[#allocation7 + $0xb8] sm:$0xff] }
  0x13   :  { %285 = vmatpush.msra.mxu2 %v122_v4  ;;  %v153_v13 = vld [vmem:[#allocation7 + $0x1d0] sm:$0xff]  ;;  %222 = vmatpush.msra.mxu1 %v155_v9  ;;  %v150_v15 = vld [vmem:[#allocation7 + $0x1b8] sm:$0xff]  ;;  %v119_v16 = vld [vmem:[#allocation7 + $0xc0] sm:$0xff] }
  0x14   :  { %347 = vmatpush.msra.mxu3 %v154_v5  ;;  %v151_v17 = vld [vmem:[#allocation7 + $0x1c0] sm:$0xff]  ;;  %161 = vmatpush.msra.mxu0 %v121_v12  ;;  %v116_v18 = vld [vmem:[#allocation7 + $0xa8] sm:$0xff]  ;;  %v117_v20 = vld [vmem:[#allocation7 + $0xb0] sm:$0xff] }
  0x15   :  { %286 = vmatpush.msra.mxu2 %v120_v10  ;;  %223 = vmatpush.msra.mxu1 %v153_v13  ;;  %v148_v19 = vld [vmem:[#allocation7 + $0x1a8] sm:$0xff]  ;;  %v149_v21 = vld [vmem:[#allocation7 + $0x1b0] sm:$0xff]  ;;  %v114_v22 = vld [vmem:[#allocation7 + $0x98] sm:$0xff] }
  0x16   :  { %348 = vmatpush.msra.mxu3 %v152_v11  ;;  %162 = vmatpush.msra.mxu0 %v119_v16  ;;  %v146_v23 = vld [vmem:[#allocation7 + $0x198] sm:$0xff]  ;;  %v115_v24 = vld [vmem:[#allocation7 + $0xa0] sm:$0xff]  ;;  %v112_v26 = vld [vmem:[#allocation7 + $0x88] sm:$0xff] }
  0x17   :  { %287 = vmatpush.msra.mxu2 %v118_v14  ;;  %224 = vmatpush.msra.mxu1 %v151_v17  ;;  %v147_v25 = vld [vmem:[#allocation7 + $0x1a0] sm:$0xff]  ;;  %v144_v27 = vld [vmem:[#allocation7 + $0x188] sm:$0xff]  ;;  %v113_v28 = vld [vmem:[#allocation7 + $0x90] sm:$0xff] }
  0x18   :  { %349 = vmatpush.msra.mxu3 %v150_v15  ;;  %163 = vmatpush.msra.mxu0 %v117_v20  ;;  %v145_v29 = vld [vmem:[#allocation7 + $0x190] sm:$0xff]  ;;  %v110_v30 = vld [vmem:[#allocation7 + $0x78] sm:$0xff]  ;;  %v111_v32 = vld [vmem:[#allocation7 + $0x80] sm:$0xff] }
  0x19   :  { %288 = vmatpush.msra.mxu2 %v116_v18  ;;  %225 = vmatpush.msra.mxu1 %v149_v21  ;;  %v142_v31 = vld [vmem:[#allocation7 + $0x178] sm:$0xff]  ;;  %v143_v33 = vld [vmem:[#allocation7 + $0x180] sm:$0xff]  ;;  %v108_v34 = vld [vmem:[#allocation7 + $0x68] sm:$0xff] }
  0x1a   :  { %350 = vmatpush.msra.mxu3 %v148_v19  ;;  %164 = vmatpush.msra.mxu0 %v115_v24  ;;  %v140_v35 = vld [vmem:[#allocation7 + $0x168] sm:$0xff]  ;;  %v109_v36 = vld [vmem:[#allocation7 + $0x70] sm:$0xff]  ;;  %v106_v38 = vld [vmem:[#allocation7 + $0x58] sm:$0xff] }
  0x1b   :  { %289 = vmatpush.msra.mxu2 %v114_v22  ;;  %226 = vmatpush.msra.mxu1 %v147_v25  ;;  %v141_v37 = vld [vmem:[#allocation7 + $0x170] sm:$0xff]  ;;  %v138_v39 = vld [vmem:[#allocation7 + $0x158] sm:$0xff]  ;;  %v107_v40 = vld [vmem:[#allocation7 + $0x60] sm:$0xff] }
  0x1c   :  { %351 = vmatpush.msra.mxu3 %v146_v23  ;;  %165 = vmatpush.msra.mxu0 %v113_v28  ;;  %v139_v41 = vld [vmem:[#allocation7 + $0x160] sm:$0xff]  ;;  %v104_v42 = vld [vmem:[#allocation7 + $0x48] sm:$0xff]  ;;  %v105_v44 = vld [vmem:[#allocation7 + $0x50] sm:$0xff] }
  0x1d   :  { %290 = vmatpush.msra.mxu2 %v112_v26  ;;  %227 = vmatpush.msra.mxu1 %v145_v29  ;;  %v136_v43 = vld [vmem:[#allocation7 + $0x148] sm:$0xff]  ;;  %v137_v45 = vld [vmem:[#allocation7 + $0x150] sm:$0xff]  ;;  %v102_v46 = vld [vmem:[#allocation7 + $0x38] sm:$0xff] }
  0x1e   :  { %352 = vmatpush.msra.mxu3 %v144_v27  ;;  %166 = vmatpush.msra.mxu0 %v111_v32  ;;  %v134_v47 = vld [vmem:[#allocation7 + $0x138] sm:$0xff]  ;;  %v103_v48 = vld [vmem:[#allocation7 + $0x40] sm:$0xff]  ;;  %v100_v50 = vld [vmem:[#allocation7 + $0x28] sm:$0xff] }
  0x1f   :  { %291 = vmatpush.msra.mxu2 %v110_v30  ;;  %228 = vmatpush.msra.mxu1 %v143_v33  ;;  %v135_v49 = vld [vmem:[#allocation7 + $0x140] sm:$0xff]  ;;  %v132_v51 = vld [vmem:[#allocation7 + $0x128] sm:$0xff]  ;;  %v101_v52 = vld [vmem:[#allocation7 + $0x30] sm:$0xff] }
  0x20   :  { %353 = vmatpush.msra.mxu3 %v142_v31  ;;  %167 = vmatpush.msra.mxu0 %v109_v36  ;;  %v133_v53 = vld [vmem:[#allocation7 + $0x130] sm:$0xff]  ;;  %v98_v54 = vld [vmem:[#allocation7 + $0x18] sm:$0xff]  ;;  %v99_v56 = vld [vmem:[#allocation7 + $0x20] sm:$0xff] }
  0x21   :  { %292 = vmatpush.msra.mxu2 %v108_v34  ;;  %229 = vmatpush.msra.mxu1 %v141_v37  ;;  %v130_v55 = vld [vmem:[#allocation7 + $0x118] sm:$0xff]  ;;  %v131_v57 = vld [vmem:[#allocation7 + $0x120] sm:$0xff]  ;;  %v96_v58 = vld [vmem:[#allocation7 + $0x8] sm:$0xff] }
  0x22   :  { %354 = vmatpush.msra.mxu3 %v140_v35  ;;  %168 = vmatpush.msra.mxu0 %v107_v40  ;;  %v128_v59 = vld [vmem:[#allocation7 + $0x108] sm:$0xff]  ;;  %v65_v60 = vld [vmem:[#allocation5] sm:$0xff]  ;;  %v66_v61 = vld [vmem:[#allocation5 + $0x8] sm:$0xff] }
  0x23   :  { %293 = vmatpush.msra.mxu2 %v106_v38  ;;  %230 = vmatpush.msra.mxu1 %v139_v41  ;;  %v97_v62 = vld [vmem:[#allocation7 + $0x10] sm:$0xff]  ;;  %v95_v0 = vld [vmem:[#allocation7] sm:$0xff]  ;;  %v68_v3 = vld [vmem:[#allocation5 + $0x18] sm:$0xff] }
  0x24   :  { %355 = vmatpush.msra.mxu3 %v138_v39  ;;  %169 = vmatpush.msra.mxu0 %v105_v44  ;;  %v129_v63 = vld [vmem:[#allocation7 + $0x110] sm:$0xff]  ;;  %v127_v1 = vld [vmem:[#allocation7 + $0x100] sm:$0xff]  ;;  %v70_v5 = vld [vmem:[#allocation5 + $0x28] sm:$0xff] }
  0x25   :  { %294 = vmatpush.msra.mxu2 %v104_v42  ;;  %231 = vmatpush.msra.mxu1 %v137_v45  ;;  %v67_v2 = vld [vmem:[#allocation5 + $0x10] sm:$0xff]  ;;  %v69_v4 = vld [vmem:[#allocation5 + $0x20] sm:$0xff]  ;;  %v72_v7 = vld [vmem:[#allocation5 + $0x38] sm:$0xff] }
  0x26   :  { %356 = vmatpush.msra.mxu3 %v136_v43  ;;  %170 = vmatpush.msra.mxu0 %v103_v48  ;;  %v71_v6 = vld [vmem:[#allocation5 + $0x30] sm:$0xff]  ;;  %v73_v8 = vld [vmem:[#allocation5 + $0x40] sm:$0xff]  ;;  %v74_v9 = vld [vmem:[#allocation5 + $0x48] sm:$0xff] }
  0x27   :  { %295 = vmatpush.msra.mxu2 %v102_v46  ;;  %232 = vmatpush.msra.mxu1 %v135_v49  ;;  %v75_v10 = vld [vmem:[#allocation5 + $0x50] sm:$0xff]  ;;  %v76_v11 = vld [vmem:[#allocation5 + $0x58] sm:$0xff]  ;;  %v77_v12 = vld [vmem:[#allocation5 + $0x60] sm:$0xff] }
  0x28   :  { %357 = vmatpush.msra.mxu3 %v134_v47  ;;  %171 = vmatpush.msra.mxu0 %v101_v52  ;;  %v78_v13 = vld [vmem:[#allocation5 + $0x68] sm:$0xff]  ;;  %v79_v14 = vld [vmem:[#allocation5 + $0x70] sm:$0xff]  ;;  %v80_v15 = vld [vmem:[#allocation5 + $0x78] sm:$0xff] }
  0x29   :  { %296 = vmatpush.msra.mxu2 %v100_v50  ;;  %233 = vmatpush.msra.mxu1 %v133_v53  ;;  %v81_v16 = vld [vmem:[#allocation5 + $0x80] sm:$0xff]  ;;  %v82_v17 = vld [vmem:[#allocation5 + $0x88] sm:$0xff]  ;;  %v83_v18 = vld [vmem:[#allocation5 + $0x90] sm:$0xff] }
  0x2a   :  { %358 = vmatpush.msra.mxu3 %v132_v51  ;;  %172 = vmatpush.msra.mxu0 %v99_v56  ;;  %v84_v19 = vld [vmem:[#allocation5 + $0x98] sm:$0xff]  ;;  %v85_v20 = vld [vmem:[#allocation5 + $0xa0] sm:$0xff]  ;;  %v86_v21 = vld [vmem:[#allocation5 + $0xa8] sm:$0xff] }
  0x2b   :  { %297 = vmatpush.msra.mxu2 %v98_v54  ;;  %234 = vmatpush.msra.mxu1 %v131_v57  ;;  %v87_v22 = vld [vmem:[#allocation5 + $0xb0] sm:$0xff]  ;;  %v88_v23 = vld [vmem:[#allocation5 + $0xb8] sm:$0xff]  ;;  %v89_v24 = vld [vmem:[#allocation5 + $0xc0] sm:$0xff] }
  0x2c   :  { %359 = vmatpush.msra.mxu3 %v130_v55  ;;  %173 = vmatpush.msra.mxu0 %v97_v62  ;;  %v90_v25 = vld [vmem:[#allocation5 + $0xc8] sm:$0xff]  ;;  %v91_v26 = vld [vmem:[#allocation5 + $0xd0] sm:$0xff]  ;;  %v92_v27 = vld [vmem:[#allocation5 + $0xd8] sm:$0xff] }
  0x2d   :  { %298 = vmatpush.msra.mxu2 %v96_v58  ;;  %235 = vmatpush.msra.mxu1 %v129_v63  ;;  %v93_v28 = vld [vmem:[#allocation5 + $0xe0] sm:$0xff]  ;;  %v94_v29 = vld [vmem:[#allocation5 + $0xe8] sm:$0xff]  ;;  %v467_v30 = vld [vmem:[%s756_s3] sm:$0x3]  ;;  %s666_s3 = smov [#allocation8]  }
  0x2e   :  { %360 = vmatpush.msra.mxu3 %v128_v59  ;;  %299 = vmatmul.f32.vlgmr.msra.gmra.mxu2 %v65_v60  ;;  %v407_v33 = vld [vmem:[#allocation2] sm:$0xff]  ;;  %v713_v35 = vperm.slane %v467_v30, 0  ;;  %v408_v38 = vld [vmem:[#allocation2 + $0x8] sm:$0xff]  ;;  %v715_v41 = vperm.slane %v467_v30, 1  ;;  %v409_v47 = vld [vmem:[#allocation2 + $0x10] sm:$0xff]  ;;  %s537_s5 = sshll.u32 %s666_s3, 4  ;;  %s538_s5 = int_to_ptr.vmem [resolvable:$true] %s537_s5 }
  0x2f   :  { %361 = vmatmul.f32.vlgmr.msra.gmra.mxu3 %v66_v61  ;;  %174 = vmatpush.msra.mxu0 %v95_v0  ;;  %v410_v51 = vld [vmem:[#allocation2 + $0x18] sm:$0xff]  ;;  %v411_v59 = vld [vmem:[#allocation2 + $0x20] sm:$0xff]  ;;  %v412_v63 = vld [vmem:[#allocation2 + $0x28] sm:$0xff] }
  0x30   :  { %236 = vmatpush.msra.mxu1 %v127_v1  ;;  %175 = vmatmul.f32.vlgmr.msra.gmra.mxu0 %v65_v60 }
  0x31   :  { %237 = vmatmul.f32.vlgmr.msra.gmra.mxu1 %v66_v61 }
  0x36   :  { %302 = vmatmul.f32.gmra.mxu2 %v67_v2 }
  0x37   :  { %364 = vmatmul.f32.gmra.mxu3 %v68_v3 }
  0x38   :  { %178 = vmatmul.f32.gmra.mxu0 %v67_v2 }
  0x39   :  { %240 = vmatmul.f32.gmra.mxu1 %v68_v3 }
  0x3e   :  { %305 = vmatmul.f32.gmra.mxu2 %v69_v4 }
  0x3f   :  { %367 = vmatmul.f32.gmra.mxu3 %v70_v5 }
  0x40   :  { %181 = vmatmul.f32.gmra.mxu0 %v69_v4 }
  0x41   :  { %243 = vmatmul.f32.gmra.mxu1 %v70_v5 }
  0x46   :  { %308 = vmatmul.f32.gmra.mxu2 %v71_v6 }
  0x47   :  { %370 = vmatmul.f32.gmra.mxu3 %v72_v7 }
  0x48   :  { %184 = vmatmul.f32.gmra.mxu0 %v71_v6 }
  0x49   :  { %246 = vmatmul.f32.gmra.mxu1 %v72_v7  ;;  %v413_v7 = vld [vmem:[#allocation2 + $0x30] sm:$0xff] }
  0x4e   :  { %311 = vmatmul.f32.gmra.mxu2 %v73_v8 }
  0x4f   :  { %373 = vmatmul.f32.gmra.mxu3 %v74_v9 }
  0x50   :  { %187 = vmatmul.f32.gmra.mxu0 %v73_v8 }
  0x51   :  { %249 = vmatmul.f32.gmra.mxu1 %v74_v9 }
  0x56   :  { %314 = vmatmul.f32.gmra.mxu2 %v75_v10 }
  0x57   :  { %376 = vmatmul.f32.gmra.mxu3 %v76_v11 }
  0x58   :  { %190 = vmatmul.f32.gmra.mxu0 %v75_v10 }
  0x59   :  { %252 = vmatmul.f32.gmra.mxu1 %v76_v11  ;;  %v414_v11 = vld [vmem:[#allocation2 + $0x38] sm:$0xff] }
  0x5e   :  { %317 = vmatmul.f32.gmra.mxu2 %v77_v12 }
  0x5f   :  { %379 = vmatmul.f32.gmra.mxu3 %v78_v13 }
  0x60   :  { %193 = vmatmul.f32.gmra.mxu0 %v77_v12 }
  0x61   :  { %255 = vmatmul.f32.gmra.mxu1 %v78_v13 }
  0x66   :  { %320 = vmatmul.f32.gmra.mxu2 %v79_v14 }
  0x67   :  { %382 = vmatmul.f32.gmra.mxu3 %v80_v15 }
  0x68   :  { %196 = vmatmul.f32.gmra.mxu0 %v79_v14 }
  0x69   :  { %258 = vmatmul.f32.gmra.mxu1 %v80_v15 }
  0x6e   :  { %323 = vmatmul.f32.gmra.mxu2 %v81_v16 }
  0x6f   :  { %385 = vmatmul.f32.gmra.mxu3 %v82_v17 }
  0x70   :  { %199 = vmatmul.f32.gmra.mxu0 %v81_v16 }
  0x71   :  { %261 = vmatmul.f32.gmra.mxu1 %v82_v17 }
  0x76   :  { %326 = vmatmul.f32.gmra.mxu2 %v83_v18 }
  0x77   :  { %388 = vmatmul.f32.gmra.mxu3 %v84_v19 }
  0x78   :  { %202 = vmatmul.f32.gmra.mxu0 %v83_v18 }
  0x79   :  { %264 = vmatmul.f32.gmra.mxu1 %v84_v19  ;;  %v415_v19 = vld [vmem:[#allocation2 + $0x40] sm:$0xff] }
  0x7e   :  { %329 = vmatmul.f32.gmra.mxu2 %v85_v20 }
  0x7f   :  { %391 = vmatmul.f32.gmra.mxu3 %v86_v21 }
  0x80   :  { %205 = vmatmul.f32.gmra.mxu0 %v85_v20 }
  0x81   :  { %267 = vmatmul.f32.gmra.mxu1 %v86_v21 }
  0x86   :  { %332 = vmatmul.f32.gmra.mxu2 %v87_v22 }
  0x87   :  { %394 = vmatmul.f32.gmra.mxu3 %v88_v23 }
  0x88   :  { %208 = vmatmul.f32.gmra.mxu0 %v87_v22 }
  0x89   :  { %270 = vmatmul.f32.gmra.mxu1 %v88_v23  ;;  %v416_v23 = vld [vmem:[#allocation2 + $0x48] sm:$0xff] }
  0x8e   :  { %335 = vmatmul.f32.gmra.mxu2 %v89_v24 }
  0x8f   :  { %397 = vmatmul.f32.gmra.mxu3 %v90_v25 }
  0x90   :  { %211 = vmatmul.f32.gmra.mxu0 %v89_v24 }
  0x91   :  { %273 = vmatmul.f32.gmra.mxu1 %v90_v25 }
  0x96   :  { %338 = vmatmul.f32.gmra.mxu2 %v91_v26 }
  0x97   :  { %400 = vmatmul.f32.gmra.mxu3 %v92_v27 }
  0x98   :  { %214 = vmatmul.f32.gmra.mxu0 %v91_v26 }
  0x99   :  { %276 = vmatmul.f32.gmra.mxu1 %v92_v27 }
  0x9e   :  { %341 = vmatmul.f32.gmra.mxu2 %v93_v28 }
  0x9f   :  { %403 = vmatmul.f32.gmra.mxu3 %v94_v29 }
  0xa0   :  { %217 = vmatmul.f32.gmra.mxu0 %v93_v28 }
  0xa1   :  { %279 = vmatmul.f32.gmra.mxu1 %v94_v29 }
  0xad   :  { %v176_v31 = vpop.f32.mrf.mxu0 }
  0xae   :  { %v238_v32 = vpop.f32.mrf.mxu1 }
  0xaf   :  { %v239_v34 = vadd.f32 %v238_v32, %v176_v31  ;;  %v417_v31 = vld [vmem:[#allocation2 + $0x50] sm:$0xff] }
  0xb1   :  { %v300_v36 = vpop.f32.mrf.mxu2  ;;  %v437_v39 = vadd.f32 %v407_v33, %v239_v34 }
  0xb2   :  { %v362_v37 = vpop.f32.mrf.mxu3 }
  0xb3   :  { %v363_v40 = vadd.f32 %v362_v37, %v300_v36  ;;  %v473_v42 = vadd.f32 %v713_v35, %v437_v39  ;;  %v418_v36 = vld [vmem:[#allocation2 + $0x58] sm:$0xff] }
  0xb5   :  { %v438_v43 = vadd.f32 %v408_v38, %v363_v40  ;;  %503 = vst [vmem:[#allocation8] sm:$0xff] %v473_v42  ;;  %v179_v45 = vpop.f32.mrf.mxu0 }
  0xb6   :  { %v241_v46 = vpop.f32.mrf.mxu1 }
  0xb7   :  { %v474_v44 = vadd.f32 %v715_v41, %v438_v43  ;;  %v242_v48 = vadd.f32 %v241_v46, %v179_v45  ;;  %v419_v45 = vld [vmem:[#allocation2 + $0x60] sm:$0xff] }
  0xb9   :  { %504 = vst [vmem:[#allocation8 + $0x8] sm:$0xff] %v474_v44  ;;  %v303_v49 = vpop.f32.mrf.mxu2  ;;  %v439_v52 = vadd.f32 %v409_v47, %v242_v48 }
  0xba   :  { %v365_v50 = vpop.f32.mrf.mxu3 }
  0xbb   :  { %v366_v53 = vadd.f32 %v365_v50, %v303_v49  ;;  %v475_v54 = vadd.f32 %v713_v35, %v439_v52  ;;  %v420_v49 = vld [vmem:[#allocation2 + $0x68] sm:$0xff] }
  0xbd   :  { %v440_v55 = vadd.f32 %v410_v51, %v366_v53  ;;  %505 = vst [vmem:[#allocation8 + $0x10] sm:$0xff] %v475_v54  ;;  %v182_v57 = vpop.f32.mrf.mxu0 }
  0xbe   :  { %v244_v58 = vpop.f32.mrf.mxu1 }
  0xbf   :  { %v476_v56 = vadd.f32 %v715_v41, %v440_v55  ;;  %v245_v60 = vadd.f32 %v244_v58, %v182_v57  ;;  %v421_v57 = vld [vmem:[#allocation2 + $0x70] sm:$0xff] }
  0xc1   :  { %506 = vst [vmem:[#allocation8 + $0x18] sm:$0xff] %v476_v56  ;;  %v306_v61 = vpop.f32.mrf.mxu2  ;;  %v441_v0 = vadd.f32 %v411_v59, %v245_v60 }
  0xc2   :  { %v368_v62 = vpop.f32.mrf.mxu3 }
  0xc3   :  { %v369_v1 = vadd.f32 %v368_v62, %v306_v61  ;;  %v477_v2 = vadd.f32 %v713_v35, %v441_v0  ;;  %v422_v61 = vld [vmem:[#allocation2 + $0x78] sm:$0xff] }
  0xc5   :  { %v442_v3 = vadd.f32 %v412_v63, %v369_v1  ;;  %507 = vst [vmem:[#allocation8 + $0x20] sm:$0xff] %v477_v2  ;;  %v185_v5 = vpop.f32.mrf.mxu0 }
  0xc6   :  { %v247_v6 = vpop.f32.mrf.mxu1 }
  0xc7   :  { %v478_v4 = vadd.f32 %v715_v41, %v442_v3  ;;  %v248_v8 = vadd.f32 %v247_v6, %v185_v5  ;;  %v423_v5 = vld [vmem:[#allocation2 + $0x80] sm:$0xff] }
  0xc9   :  { %508 = vst [vmem:[#allocation8 + $0x28] sm:$0xff] %v478_v4  ;;  %v309_v9 = vpop.f32.mrf.mxu2  ;;  %v443_v12 = vadd.f32 %v413_v7, %v248_v8 }
  0xca   :  { %v371_v10 = vpop.f32.mrf.mxu3 }
  0xcb   :  { %v372_v13 = vadd.f32 %v371_v10, %v309_v9  ;;  %v479_v14 = vadd.f32 %v713_v35, %v443_v12  ;;  %v424_v9 = vld [vmem:[#allocation2 + $0x88] sm:$0xff] }
  0xcd   :  { %v444_v15 = vadd.f32 %v414_v11, %v372_v13  ;;  %509 = vst [vmem:[#allocation8 + $0x30] sm:$0xff] %v479_v14  ;;  %v188_v17 = vpop.f32.mrf.mxu0 }
  0xce   :  { %v250_v18 = vpop.f32.mrf.mxu1 }
  0xcf   :  { %v480_v16 = vadd.f32 %v715_v41, %v444_v15  ;;  %v251_v20 = vadd.f32 %v250_v18, %v188_v17  ;;  %v425_v17 = vld [vmem:[#allocation2 + $0x90] sm:$0xff] }
  0xd1   :  { %510 = vst [vmem:[#allocation8 + $0x38] sm:$0xff] %v480_v16  ;;  %v312_v21 = vpop.f32.mrf.mxu2  ;;  %v445_v24 = vadd.f32 %v415_v19, %v251_v20 }
  0xd2   :  { %v374_v22 = vpop.f32.mrf.mxu3 }
  0xd3   :  { %v375_v25 = vadd.f32 %v374_v22, %v312_v21  ;;  %v481_v26 = vadd.f32 %v713_v35, %v445_v24  ;;  %v426_v21 = vld [vmem:[#allocation2 + $0x98] sm:$0xff] }
  0xd5   :  { %v446_v27 = vadd.f32 %v416_v23, %v375_v25  ;;  %511 = vst [vmem:[#allocation8 + $0x40] sm:$0xff] %v481_v26  ;;  %v191_v29 = vpop.f32.mrf.mxu0 }
  0xd6   :  { %v253_v30 = vpop.f32.mrf.mxu1 }
  0xd7   :  { %v482_v28 = vadd.f32 %v715_v41, %v446_v27  ;;  %v254_v32 = vadd.f32 %v253_v30, %v191_v29  ;;  %v427_v29 = vld [vmem:[#allocation2 + $0xa0] sm:$0xff] }
  0xd9   :  { %512 = vst [vmem:[#allocation8 + $0x48] sm:$0xff] %v482_v28  ;;  %v315_v33 = vpop.f32.mrf.mxu2  ;;  %v447_v37 = vadd.f32 %v417_v31, %v254_v32 }
  0xda   :  { %v377_v34 = vpop.f32.mrf.mxu3 }
  0xdb   :  { %v378_v38 = vadd.f32 %v377_v34, %v315_v33  ;;  %v483_v39 = vadd.f32 %v713_v35, %v447_v37  ;;  %v428_v33 = vld [vmem:[#allocation2 + $0xa8] sm:$0xff] }
  0xdd   :  { %v448_v40 = vadd.f32 %v418_v36, %v378_v38  ;;  %513 = vst [vmem:[#allocation8 + $0x50] sm:$0xff] %v483_v39  ;;  %v194_v43 = vpop.f32.mrf.mxu0 }
  0xde   :  { %v256_v44 = vpop.f32.mrf.mxu1 }
  0xdf   :  { %v484_v42 = vadd.f32 %v715_v41, %v448_v40  ;;  %v257_v46 = vadd.f32 %v256_v44, %v194_v43  ;;  %v429_v43 = vld [vmem:[#allocation2 + $0xb0] sm:$0xff] }
  0xe1   :  { %514 = vst [vmem:[#allocation8 + $0x58] sm:$0xff] %v484_v42  ;;  %v318_v47 = vpop.f32.mrf.mxu2  ;;  %v449_v50 = vadd.f32 %v419_v45, %v257_v46 }
  0xe2   :  { %v380_v48 = vpop.f32.mrf.mxu3 }
  0xe3   :  { %v381_v51 = vadd.f32 %v380_v48, %v318_v47  ;;  %v485_v52 = vadd.f32 %v713_v35, %v449_v50  ;;  %v430_v47 = vld [vmem:[#allocation2 + $0xb8] sm:$0xff] }
  0xe5   :  { %v450_v53 = vadd.f32 %v420_v49, %v381_v51  ;;  %515 = vst [vmem:[#allocation8 + $0x60] sm:$0xff] %v485_v52  ;;  %v197_v55 = vpop.f32.mrf.mxu0 }
  0xe6   :  { %v259_v56 = vpop.f32.mrf.mxu1 }
  0xe7   :  { %v486_v54 = vadd.f32 %v715_v41, %v450_v53  ;;  %v260_v58 = vadd.f32 %v259_v56, %v197_v55  ;;  %v431_v55 = vld [vmem:[#allocation2 + $0xc0] sm:$0xff] }
  0xe9   :  { %516 = vst [vmem:[#allocation8 + $0x68] sm:$0xff] %v486_v54  ;;  %v321_v59 = vpop.f32.mrf.mxu2  ;;  %v451_v62 = vadd.f32 %v421_v57, %v260_v58 }
  0xea   :  { %v383_v60 = vpop.f32.mrf.mxu3 }
  0xeb   :  { %v384_v63 = vadd.f32 %v383_v60, %v321_v59  ;;  %v487_v0 = vadd.f32 %v713_v35, %v451_v62  ;;  %v432_v59 = vld [vmem:[#allocation2 + $0xc8] sm:$0xff] }
  0xed   :  { %v452_v1 = vadd.f32 %v422_v61, %v384_v63  ;;  %517 = vst [vmem:[#allocation8 + $0x70] sm:$0xff] %v487_v0  ;;  %v200_v3 = vpop.f32.mrf.mxu0 }
  0xee   :  { %v262_v4 = vpop.f32.mrf.mxu1 }
  0xef   :  { %v488_v2 = vadd.f32 %v715_v41, %v452_v1  ;;  %v263_v6 = vadd.f32 %v262_v4, %v200_v3  ;;  %v433_v3 = vld [vmem:[#allocation2 + $0xd0] sm:$0xff] }
  0xf1   :  { %518 = vst [vmem:[#allocation8 + $0x78] sm:$0xff] %v488_v2  ;;  %v324_v7 = vpop.f32.mrf.mxu2  ;;  %v453_v10 = vadd.f32 %v423_v5, %v263_v6 }
  0xf2   :  { %v386_v8 = vpop.f32.mrf.mxu3 }
  0xf3   :  { %v387_v11 = vadd.f32 %v386_v8, %v324_v7  ;;  %v489_v12 = vadd.f32 %v713_v35, %v453_v10  ;;  %v434_v7 = vld [vmem:[#allocation2 + $0xd8] sm:$0xff] }
  0xf5   :  { %v454_v13 = vadd.f32 %v424_v9, %v387_v11  ;;  %519 = vst [vmem:[#allocation8 + $0x80] sm:$0xff] %v489_v12  ;;  %v203_v15 = vpop.f32.mrf.mxu0 }
  0xf6   :  { %v265_v16 = vpop.f32.mrf.mxu1 }
  0xf7   :  { %v490_v14 = vadd.f32 %v715_v41, %v454_v13  ;;  %v266_v18 = vadd.f32 %v265_v16, %v203_v15  ;;  %v435_v15 = vld [vmem:[#allocation2 + $0xe0] sm:$0xff] }
  0xf9   :  { %520 = vst [vmem:[#allocation8 + $0x88] sm:$0xff] %v490_v14  ;;  %v327_v19 = vpop.f32.mrf.mxu2  ;;  %v455_v22 = vadd.f32 %v425_v17, %v266_v18 }
  0xfa   :  { %v389_v20 = vpop.f32.mrf.mxu3 }
  0xfb   :  { %v390_v23 = vadd.f32 %v389_v20, %v327_v19  ;;  %v491_v24 = vadd.f32 %v713_v35, %v455_v22  ;;  %v436_v19 = vld [vmem:[#allocation2 + $0xe8] sm:$0xff] }
  0xfd   :  { %v456_v25 = vadd.f32 %v426_v21, %v390_v23  ;;  %521 = vst [vmem:[#allocation8 + $0x90] sm:$0xff] %v491_v24  ;;  %v206_v27 = vpop.f32.mrf.mxu0 }
  0xfe   :  { %v268_v28 = vpop.f32.mrf.mxu1 }
  0xff   :  { %v492_v26 = vadd.f32 %v715_v41, %v456_v25  ;;  %v269_v30 = vadd.f32 %v268_v28, %v206_v27 }
 0x101   :  { %522 = vst [vmem:[#allocation8 + $0x98] sm:$0xff] %v492_v26  ;;  %v330_v31 = vpop.f32.mrf.mxu2  ;;  %v457_v34 = vadd.f32 %v427_v29, %v269_v30 }
 0x102   :  { %v392_v32 = vpop.f32.mrf.mxu3 }
 0x103   :  { %v393_v36 = vadd.f32 %v392_v32, %v330_v31  ;;  %v493_v37 = vadd.f32 %v713_v35, %v457_v34 }
 0x105   :  { %v458_v38 = vadd.f32 %v428_v33, %v393_v36  ;;  %523 = vst [vmem:[#allocation8 + $0xa0] sm:$0xff] %v493_v37  ;;  %v209_v40 = vpop.f32.mrf.mxu0 }
 0x106   :  { %v271_v42 = vpop.f32.mrf.mxu1 }
 0x107   :  { %v494_v39 = vadd.f32 %v715_v41, %v458_v38  ;;  %v272_v44 = vadd.f32 %v271_v42, %v209_v40 }
 0x109   :  { %524 = vst [vmem:[#allocation8 + $0xa8] sm:$0xff] %v494_v39  ;;  %v333_v45 = vpop.f32.mrf.mxu2  ;;  %v459_v48 = vadd.f32 %v429_v43, %v272_v44 }
 0x10a   :  { %v395_v46 = vpop.f32.mrf.mxu3 }
 0x10b   :  { %v396_v49 = vadd.f32 %v395_v46, %v333_v45  ;;  %v495_v50 = vadd.f32 %v713_v35, %v459_v48 }
 0x10d   :  { %v460_v51 = vadd.f32 %v430_v47, %v396_v49  ;;  %525 = vst [vmem:[#allocation8 + $0xb0] sm:$0xff] %v495_v50  ;;  %v212_v53 = vpop.f32.mrf.mxu0 }
 0x10e   :  { %v274_v54 = vpop.f32.mrf.mxu1 }
 0x10f   :  { %v496_v52 = vadd.f32 %v715_v41, %v460_v51  ;;  %v275_v56 = vadd.f32 %v274_v54, %v212_v53 }
 0x111   :  { %526 = vst [vmem:[#allocation8 + $0xb8] sm:$0xff] %v496_v52  ;;  %v336_v57 = vpop.f32.mrf.mxu2  ;;  %v461_v60 = vadd.f32 %v431_v55, %v275_v56 }
 0x112   :  { %v398_v58 = vpop.f32.mrf.mxu3 }
 0x113   :  { %v399_v61 = vadd.f32 %v398_v58, %v336_v57  ;;  %v497_v62 = vadd.f32 %v713_v35, %v461_v60 }
 0x115   :  { %v462_v63 = vadd.f32 %v432_v59, %v399_v61  ;;  %527 = vst [vmem:[#allocation8 + $0xc0] sm:$0xff] %v497_v62  ;;  %v215_v1 = vpop.f32.mrf.mxu0 }
 0x116   :  { %v277_v2 = vpop.f32.mrf.mxu1 }
 0x117   :  { %v498_v0 = vadd.f32 %v715_v41, %v462_v63  ;;  %v278_v4 = vadd.f32 %v277_v2, %v215_v1 }
 0x119   :  { %528 = vst [vmem:[#allocation8 + $0xc8] sm:$0xff] %v498_v0  ;;  %v339_v5 = vpop.f32.mrf.mxu2  ;;  %v463_v8 = vadd.f32 %v433_v3, %v278_v4 }
 0x11a   :  { %v401_v6 = vpop.f32.mrf.mxu3 }
 0x11b   :  { %v402_v9 = vadd.f32 %v401_v6, %v339_v5  ;;  %v499_v10 = vadd.f32 %v713_v35, %v463_v8 }
 0x11d   :  { %v464_v11 = vadd.f32 %v434_v7, %v402_v9  ;;  %529 = vst [vmem:[#allocation8 + $0xd0] sm:$0xff] %v499_v10  ;;  %v218_v13 = vpop.f32.mrf.mxu0 }
 0x11e   :  { %v280_v14 = vpop.f32.mrf.mxu1 }
 0x11f   :  { %v500_v12 = vadd.f32 %v715_v41, %v464_v11  ;;  %v281_v16 = vadd.f32 %v280_v14, %v218_v13 }
 0x121   :  { %530 = vst [vmem:[#allocation8 + $0xd8] sm:$0xff] %v500_v12  ;;  %v342_v17 = vpop.f32.mrf.mxu2  ;;  %v465_v20 = vadd.f32 %v435_v15, %v281_v16 }
 0x122   :  { %v404_v18 = vpop.f32.mrf.mxu3 }
 0x123   :  { %v405_v21 = vadd.f32 %v404_v18, %v342_v17  ;;  %v501_v22 = vadd.f32 %v713_v35, %v465_v20 }
 0x125   :  { %v466_v23 = vadd.f32 %v436_v19, %v405_v21  ;;  %531 = vst [vmem:[#allocation8 + $0xe0] sm:$0xff] %v501_v22 }
 0x127   :  { %v502_v24 = vadd.f32 %v715_v41, %v466_v23 }
 0x129   :  { %532 = vst [vmem:[#allocation8 + $0xe8] sm:$0xff] %v502_v24 }
 0x12a   :  { %545 = dma.vmem_to_hbm [thread:$0]  %s538_s5, 3840, %s540_s8, [#allocation4], %s662_s23, %s662_s23, %s663_s24  }
 0x12b   :  { %659 = dma.done.wait [#allocation4], 3840  }
 0x12c   :  { %660 = vsyncadd [#allocation4], 4294963456 }
 0x12d   :  { %550 = vsyncpa [#allocation3], 1 }
 0x12e   :  { %551 = vsyncpa [#allocation6], 1 }
 0x12f   :  { %552 = vsyncpa [#allocation4], 1 }

</bundles_post_ra>
